<compile_context>
chip_gen: v7x
topology: tpu7x:2x2x1
jax: 0.10.0
libtpu: 0.0.40
codegen_flags: <defaults>
</compile_context>

<pallas_src>
import jax
import jax.numpy as jnp
from jax.experimental import pallas as pl
from jax.experimental.pallas import tpu as pltpu


def _out_transition_kernel(x_ref, w_ref, b_ref, o_ref):
    # x_ref: (1, C, Rt, 128) VMEM   w_ref: (L, C) SMEM   b_ref: (L,) SMEM
    # o_ref: (1, L, Rt, 128) VMEM
    L, C = w_ref.shape

    # Hoist the tiny SMEM parameter reads once per grid step.
    w = [[w_ref[l, c] for c in range(C)] for l in range(L)]
    b = [b_ref[l] for l in range(L)]

    # Dense (Rt, 128) per-channel slabs: full-vreg VPU/EUP density.
    xc = [x_ref[0, c] for c in range(C)]

    # Unrolled VPU scale-adds per label + direct per-label store
    # (no concatenate -> no sublane relayout, unmasked vst).
    for l in range(L):
        acc = xc[0] * w[l][0]
        for c in range(1, C):
            acc = acc + xc[c] * w[l][c]
        acc = acc + b[l]
        o_ref[0, l] = jax.nn.sigmoid(acc).astype(o_ref.dtype)


def _pick_row_tile(r, max_rows=2048):
    """Rows of 128 lanes per block.

    max_rows=2048 -> 256K spatial elems/step (~4 MiB f32 input block,
    ~3 MiB output block; ~14 MiB double-buffered) -- large enough to hide
    the per-step overhead on all generations while fitting v5e's 16 MiB
    default scoped VMEM and v7x's 64 MiB physical VMEM.  Must be a multiple
    of 8 (sublane rule) when it does not equal the full extent.
    """
    if r <= max_rows:
        return r              # full-extent block: always legal
    return max_rows           # multiple of 8; ragged tail handled by cdiv grid


def output_transition(x, weight, bias):
    """x: (N, C, D, H, W) f32.  weight: (L, C, 1, 1, 1).  bias: (L,)."""
    N, C, D, H, W = x.shape
    L = weight.shape[0]
    S = D * H * W

    # Native-layout views only; pad spatial to a multiple of 128 lanes
    # (no-op for aligned shapes) so it folds into (R, 128) slabs.
    s_pad = ((S + 127) // 128) * 128
    x3 = x.reshape(N, C, S)
    if s_pad != S:
        x3 = jnp.pad(x3, ((0, 0), (0, 0), (0, s_pad - S)))
    R = s_pad // 128
    x4 = x3.reshape(N, C, R, 128)

    w2 = weight.reshape(L, C)
    b1 = bias.reshape(L)

    rt = _pick_row_tile(R)
    grid = (N, pl.cdiv(R, rt))

    itemsize = jnp.dtype(x.dtype).itemsize
    in_block_bytes = C * rt * 128 * itemsize
    out_block_bytes = L * rt * 128 * itemsize
    # Cover double-buffered in+out blocks with headroom; stay within the
    # 40-48 MiB guidance for v7x's 64 MiB physical VMEM.
    vmem_limit = int(min(max(4 * (in_block_bytes + out_block_bytes) + (4 << 20),
                             32 << 20),
                         48 << 20))

    cost = pl.CostEstimate(
        flops=N * S * L * (2 * C + 1),          # MACs + bias add per output elem
        transcendentals=N * S * L,              # one exp per sigmoid
        bytes_accessed=N * S * (C + L) * itemsize,
    )

    out4 = pl.pallas_call(
        _out_transition_kernel,
        out_shape=jax.ShapeDtypeStruct((N, L, R, 128), x.dtype),
        grid_spec=pltpu.PrefetchScalarGridSpec(
            num_scalar_prefetch=0,
            grid=grid,
            in_specs=[
                # Activation block: channels on a small leading dim, spatial as
                # dense (rt, 128) slabs on (sublane, lane).
                pl.BlockSpec((1, C, rt, 128), lambda n, s: (n, 0, s, 0)),
                # Tiny weight / bias tables as SMEM scalars.
                pl.BlockSpec(memory_space=pltpu.MemorySpace.SMEM),
                pl.BlockSpec(memory_space=pltpu.MemorySpace.SMEM),
            ],
            out_specs=pl.BlockSpec((1, L, rt, 128), lambda n, s: (n, 0, s, 0)),
        ),
        compiler_params=pltpu.CompilerParams(
            dimension_semantics=("parallel", "parallel"),
            vmem_limit_bytes=vmem_limit,
        ),
        cost_estimate=cost,
    )(x4, w2, b1)

    out3 = out4.reshape(N, L, s_pad)
    if s_pad != S:
        out3 = out3[:, :, :S]
    return out3.reshape(N, L, D, H, W)


def _reference(x, weight, bias):
    # Pure-JAX reference: 1x1x1 conv == einsum over channels, then sigmoid.
    w2d = weight.reshape(weight.shape[0], weight.shape[1])  # (L, C)
    y = jnp.einsum("ncdhw,lc->nldhw", x, w2d) + bias[None, :, None, None, None]
    return jax.nn.sigmoid(y)


if __name__ == "__main__":
    inChans, n_labels = 4, 3
    N, D, H, W = 2, 8, 8, 8

    key = jax.random.PRNGKey(0)
    kx, kw, kb = jax.random.split(key, 3)

    x = jax.random.normal(kx, (N, inChans, D, H, W), dtype=jnp.float32)

    # Deterministic parameter init (Conv3d-like uniform bound = 1/sqrt(fan_in)).
    fan_in = inChans * 1 * 1 * 1
    bound = 1.0 / (fan_in ** 0.5)
    weight = jax.random.uniform(
        kw, (n_labels, inChans, 1, 1, 1), minval=-bound, maxval=bound,
        dtype=jnp.float32)
    bias = jax.random.uniform(
        kb, (n_labels,), minval=-bound, maxval=bound, dtype=jnp.float32)

    out = output_transition(x, weight, bias)
    out = jax.block_until_ready(out)

    ref = _reference(x, weight, bias)
    assert out.shape == (N, n_labels, D, H, W)
    assert jnp.allclose(out, ref, atol=1e-5, rtol=1e-5)

    print("KERNEL_OK")
</pallas_src>

<mosaic_0001>
module attributes {stable_mosaic.version = 11 : i64} {
  func.func @_out_transition_kernel(%arg0: i32, %arg1: i32, %arg2: memref<1x4x4x128xf32, #tpu.memory_space<vmem>>, %arg3: memref<3x4xf32, #tpu.memory_space<smem>>, %arg4: memref<3xf32, #tpu.memory_space<smem>>, %arg5: memref<1x3x4x128xf32, #tpu.memory_space<vmem>>) attributes {dimension_semantics = [#tpu.dimension_semantics<parallel>, #tpu.dimension_semantics<parallel>], iteration_bounds = array<i64: 2, 1>, scalar_prefetch = 0 : i64, scratch_operands = 0 : i64, tpu.core_type = #tpu.core_type<tc>, window_params = [{transform_indices = @transform_0, window_bounds = array<i64: 1, 4, 4, 128>}, {transform_indices = @transform_1, window_bounds = array<i64: 3, 4>}, {transform_indices = @transform_2, window_bounds = array<i64: 3>}, {transform_indices = @transform_3, window_bounds = array<i64: 1, 3, 4, 128>}]} {
    %c0 = arith.constant 0 : index
    %c0_0 = arith.constant 0 : index
    %0 = memref.load %arg3[%c0, %c0_0] : memref<3x4xf32, #tpu.memory_space<smem>>
    %c0_1 = arith.constant 0 : index
    %c1 = arith.constant 1 : index
    %1 = memref.load %arg3[%c0_1, %c1] : memref<3x4xf32, #tpu.memory_space<smem>>
    %c0_2 = arith.constant 0 : index
    %c2 = arith.constant 2 : index
    %2 = memref.load %arg3[%c0_2, %c2] : memref<3x4xf32, #tpu.memory_space<smem>>
    %c0_3 = arith.constant 0 : index
    %c3 = arith.constant 3 : index
    %3 = memref.load %arg3[%c0_3, %c3] : memref<3x4xf32, #tpu.memory_space<smem>>
    %c1_4 = arith.constant 1 : index
    %c0_5 = arith.constant 0 : index
    %4 = memref.load %arg3[%c1_4, %c0_5] : memref<3x4xf32, #tpu.memory_space<smem>>
    %c1_6 = arith.constant 1 : index
    %c1_7 = arith.constant 1 : index
    %5 = memref.load %arg3[%c1_6, %c1_7] : memref<3x4xf32, #tpu.memory_space<smem>>
    %c1_8 = arith.constant 1 : index
    %c2_9 = arith.constant 2 : index
    %6 = memref.load %arg3[%c1_8, %c2_9] : memref<3x4xf32, #tpu.memory_space<smem>>
    %c1_10 = arith.constant 1 : index
    %c3_11 = arith.constant 3 : index
    %7 = memref.load %arg3[%c1_10, %c3_11] : memref<3x4xf32, #tpu.memory_space<smem>>
    %c2_12 = arith.constant 2 : index
    %c0_13 = arith.constant 0 : index
    %8 = memref.load %arg3[%c2_12, %c0_13] : memref<3x4xf32, #tpu.memory_space<smem>>
    %c2_14 = arith.constant 2 : index
    %c1_15 = arith.constant 1 : index
    %9 = memref.load %arg3[%c2_14, %c1_15] : memref<3x4xf32, #tpu.memory_space<smem>>
    %c2_16 = arith.constant 2 : index
    %c2_17 = arith.constant 2 : index
    %10 = memref.load %arg3[%c2_16, %c2_17] : memref<3x4xf32, #tpu.memory_space<smem>>
    %c2_18 = arith.constant 2 : index
    %c3_19 = arith.constant 3 : index
    %11 = memref.load %arg3[%c2_18, %c3_19] : memref<3x4xf32, #tpu.memory_space<smem>>
    %c0_20 = arith.constant 0 : index
    %12 = memref.load %arg4[%c0_20] : memref<3xf32, #tpu.memory_space<smem>>
    %c1_21 = arith.constant 1 : index
    %13 = memref.load %arg4[%c1_21] : memref<3xf32, #tpu.memory_space<smem>>
    %c2_22 = arith.constant 2 : index
    %14 = memref.load %arg4[%c2_22] : memref<3xf32, #tpu.memory_space<smem>>
    %c0_23 = arith.constant 0 : index
    %c0_24 = arith.constant 0 : index
    %c0_25 = arith.constant 0 : index
    %c0_26 = arith.constant 0 : index
    %15 = vector.load %arg2[%c0_23, %c0_24, %c0_25, %c0_26] : memref<1x4x4x128xf32, #tpu.memory_space<vmem>>, vector<1x1x4x128xf32>
    %16 = vector.shape_cast %15 : vector<1x1x4x128xf32> to vector<4x128xf32>
    %c0_27 = arith.constant 0 : index
    %c1_28 = arith.constant 1 : index
    %c0_29 = arith.constant 0 : index
    %c0_30 = arith.constant 0 : index
    %17 = vector.load %arg2[%c0_27, %c1_28, %c0_29, %c0_30] : memref<1x4x4x128xf32, #tpu.memory_space<vmem>>, vector<1x1x4x128xf32>
    %18 = vector.shape_cast %17 : vector<1x1x4x128xf32> to vector<4x128xf32>
    %c0_31 = arith.constant 0 : index
    %c2_32 = arith.constant 2 : index
    %c0_33 = arith.constant 0 : index
    %c0_34 = arith.constant 0 : index
    %19 = vector.load %arg2[%c0_31, %c2_32, %c0_33, %c0_34] : memref<1x4x4x128xf32, #tpu.memory_space<vmem>>, vector<1x1x4x128xf32>
    %20 = vector.shape_cast %19 : vector<1x1x4x128xf32> to vector<4x128xf32>
    %c0_35 = arith.constant 0 : index
    %c3_36 = arith.constant 3 : index
    %c0_37 = arith.constant 0 : index
    %c0_38 = arith.constant 0 : index
    %21 = vector.load %arg2[%c0_35, %c3_36, %c0_37, %c0_38] : memref<1x4x4x128xf32, #tpu.memory_space<vmem>>, vector<1x1x4x128xf32>
    %22 = vector.shape_cast %21 : vector<1x1x4x128xf32> to vector<4x128xf32>
    %23 = vector.broadcast %0 : f32 to vector<4x128xf32>
    %24 = arith.mulf %16, %23 : vector<4x128xf32>
    %25 = vector.broadcast %1 : f32 to vector<4x128xf32>
    %26 = arith.mulf %18, %25 : vector<4x128xf32>
    %27 = arith.addf %24, %26 : vector<4x128xf32>
    %28 = vector.broadcast %2 : f32 to vector<4x128xf32>
    %29 = arith.mulf %20, %28 : vector<4x128xf32>
    %30 = arith.addf %27, %29 : vector<4x128xf32>
    %31 = vector.broadcast %3 : f32 to vector<4x128xf32>
    %32 = arith.mulf %22, %31 : vector<4x128xf32>
    %33 = arith.addf %30, %32 : vector<4x128xf32>
    %34 = vector.broadcast %12 : f32 to vector<4x128xf32>
    %35 = arith.addf %33, %34 : vector<4x128xf32>
    %36 = arith.negf %35 : vector<4x128xf32>
    %37 = math.exp %36 : vector<4x128xf32>
    %cst = arith.constant 1.000000e+00 : f32
    %38 = vector.broadcast %cst : f32 to vector<4x128xf32>
    %39 = arith.addf %38, %37 : vector<4x128xf32>
    %40 = arith.divf %38, %39 : vector<4x128xf32>
    %c0_39 = arith.constant 0 : index
    %c0_40 = arith.constant 0 : index
    %c0_41 = arith.constant 0 : index
    %c0_42 = arith.constant 0 : index
    %41 = vector.load %arg5[%c0_39, %c0_40, %c0_41, %c0_42] : memref<1x3x4x128xf32, #tpu.memory_space<vmem>>, vector<1x1x4x128xf32>
    %42 = vector.shape_cast %41 : vector<1x1x4x128xf32> to vector<4x128xf32>
    %43 = vector.shape_cast %40 : vector<4x128xf32> to vector<1x1x4x128xf32>
    tpu.vector_store %arg5[%c0_39, %c0_40, %c0_41, %c0_42], %43 {strides = array<i32>} : memref<1x3x4x128xf32, #tpu.memory_space<vmem>>, vector<1x1x4x128xf32>,
    %44 = vector.broadcast %4 : f32 to vector<4x128xf32>
    %45 = arith.mulf %16, %44 : vector<4x128xf32>
    %46 = vector.broadcast %5 : f32 to vector<4x128xf32>
    %47 = arith.mulf %18, %46 : vector<4x128xf32>
    %48 = arith.addf %45, %47 : vector<4x128xf32>
    %49 = vector.broadcast %6 : f32 to vector<4x128xf32>
    %50 = arith.mulf %20, %49 : vector<4x128xf32>
    %51 = arith.addf %48, %50 : vector<4x128xf32>
    %52 = vector.broadcast %7 : f32 to vector<4x128xf32>
    %53 = arith.mulf %22, %52 : vector<4x128xf32>
    %54 = arith.addf %51, %53 : vector<4x128xf32>
    %55 = vector.broadcast %13 : f32 to vector<4x128xf32>
    %56 = arith.addf %54, %55 : vector<4x128xf32>
    %57 = arith.negf %56 : vector<4x128xf32>
    %58 = math.exp %57 : vector<4x128xf32>
    %cst_43 = arith.constant 1.000000e+00 : f32
    %59 = vector.broadcast %cst_43 : f32 to vector<4x128xf32>
    %60 = arith.addf %59, %58 : vector<4x128xf32>
    %61 = arith.divf %59, %60 : vector<4x128xf32>
    %c0_44 = arith.constant 0 : index
    %c1_45 = arith.constant 1 : index
    %c0_46 = arith.constant 0 : index
    %c0_47 = arith.constant 0 : index
    %62 = vector.load %arg5[%c0_44, %c1_45, %c0_46, %c0_47] : memref<1x3x4x128xf32, #tpu.memory_space<vmem>>, vector<1x1x4x128xf32>
    %63 = vector.shape_cast %62 : vector<1x1x4x128xf32> to vector<4x128xf32>
    %64 = vector.shape_cast %61 : vector<4x128xf32> to vector<1x1x4x128xf32>
    tpu.vector_store %arg5[%c0_44, %c1_45, %c0_46, %c0_47], %64 {strides = array<i32>} : memref<1x3x4x128xf32, #tpu.memory_space<vmem>>, vector<1x1x4x128xf32>,
    %65 = vector.broadcast %8 : f32 to vector<4x128xf32>
    %66 = arith.mulf %16, %65 : vector<4x128xf32>
    %67 = vector.broadcast %9 : f32 to vector<4x128xf32>
    %68 = arith.mulf %18, %67 : vector<4x128xf32>
    %69 = arith.addf %66, %68 : vector<4x128xf32>
    %70 = vector.broadcast %10 : f32 to vector<4x128xf32>
    %71 = arith.mulf %20, %70 : vector<4x128xf32>
    %72 = arith.addf %69, %71 : vector<4x128xf32>
    %73 = vector.broadcast %11 : f32 to vector<4x128xf32>
    %74 = arith.mulf %22, %73 : vector<4x128xf32>
    %75 = arith.addf %72, %74 : vector<4x128xf32>
    %76 = vector.broadcast %14 : f32 to vector<4x128xf32>
    %77 = arith.addf %75, %76 : vector<4x128xf32>
    %78 = arith.negf %77 : vector<4x128xf32>
    %79 = math.exp %78 : vector<4x128xf32>
    %cst_48 = arith.constant 1.000000e+00 : f32
    %80 = vector.broadcast %cst_48 : f32 to vector<4x128xf32>
    %81 = arith.addf %80, %79 : vector<4x128xf32>
    %82 = arith.divf %80, %81 : vector<4x128xf32>
    %c0_49 = arith.constant 0 : index
    %c2_50 = arith.constant 2 : index
    %c0_51 = arith.constant 0 : index
    %c0_52 = arith.constant 0 : index
    %83 = vector.load %arg5[%c0_49, %c2_50, %c0_51, %c0_52] : memref<1x3x4x128xf32, #tpu.memory_space<vmem>>, vector<1x1x4x128xf32>
    %84 = vector.shape_cast %83 : vector<1x1x4x128xf32> to vector<4x128xf32>
    %85 = vector.shape_cast %82 : vector<4x128xf32> to vector<1x1x4x128xf32>
    tpu.vector_store %arg5[%c0_49, %c2_50, %c0_51, %c0_52], %85 {strides = array<i32>} : memref<1x3x4x128xf32, #tpu.memory_space<vmem>>, vector<1x1x4x128xf32>,
    return
  }
  func.func @transform_0(%arg0: i32, %arg1: i32) -> (i32, i32, i32, i32) {
    %c0_i32 = arith.constant 0 : i32
    %c0_i32_0 = arith.constant 0 : i32
    %c0_i32_1 = arith.constant 0 : i32
    return %arg0, %c0_i32, %arg1, %c0_i32_0 : i32, i32, i32, i32
  }
  func.func @transform_1(%arg0: i32, %arg1: i32) -> (i32, i32) {
    %c0_i32 = arith.constant 0 : i32
    %c0_i32_0 = arith.constant 0 : i32
    %c0_i32_1 = arith.constant 0 : i32
    return %c0_i32, %c0_i32_0 : i32, i32
  }
  func.func @transform_2(%arg0: i32, %arg1: i32) -> i32 {
    %c0_i32 = arith.constant 0 : i32
    %c0_i32_0 = arith.constant 0 : i32
    return %c0_i32 : i32
  }
  func.func @transform_3(%arg0: i32, %arg1: i32) -> (i32, i32, i32, i32) {
    %c0_i32 = arith.constant 0 : i32
    %c0_i32_0 = arith.constant 0 : i32
    %c0_i32_1 = arith.constant 0 : i32
    return %arg0, %c0_i32, %arg1, %c0_i32_0 : i32, i32, i32, i32
  }
}

</mosaic_0001>

<bundles_post_ra>
// kernel: tpu_custom_call.1
= control target key start
LH: loop header
LB: loop body
LE: loop exit
PB: predicated region body
PF: predicated region fallthrough
CT: control target
= control target key end

     0   :  { %8 = vsyncpa [#allocation3], 0  ;;  %s985_s0 = inlined_call_operand.hbm [shape: f32[2,4,4,128], index: 0, kind: input, shape index: {}]   ;;  %s986_s1 = inlined_call_operand.hbm [shape: f32[3,4], index: 1, kind: input, shape index: {}]   ;;  %s987_s2 = inlined_call_operand.vmem [shape: f32[3], index: 2, kind: input, shape index: {}]   ;;  %s988_s3 = inlined_call_operand.hbm [shape: f32[2,3,4,128], index: 3, kind: output, shape index: {}]  }
   0x1   :  { %10 = vsyncpa [#allocation3 + $0x1], 0 }
   0x2   :  { %11 = vsyncpa [#allocation5], 0 }
   0x3   :  { %12 = vsyncpa [#allocation6], 0 }
   0x4   :  { %13 = vsyncpa [#allocation4], 0 }
   0x5   :  { %15 = vsyncpa [#allocation4 + $0x1], 0  ;;  %s756_s12 = smov 0   ;;  %s758_s13 = smov 0  }
   0x6   :  { %s760_s14 = smov 0   ;;  %s762_s15 = smov 0  }
   0x7   :  { %s764_s16 = smov 0   ;;  %s766_s17 = smov 0  }
   0x8 LB: > { %s439_s18 = sadd.s32 4294967295, %s726_s17   ;;  %s440_s19 = sadd.s32 4294967294, %s726_s17   ;;  %s726_s17 = sphi %s766_s17, %s21_s17   ;;  %s722_s16 = sphi %s764_s16, %s1009_s16   ;;  %s718_s15 = sphi %s762_s15, %s1008_s15   ;;  %s714_s14 = sphi %s760_s14, %s1007_s14   ;;  %s710_s13 = sphi %s758_s13, %s1006_s13   ;;  %s706_s12 = sphi %s756_s12, %s1005_s12  }
   0x9   : > { %s42_s20 = sadd.s32 1, %s714_s14  ;;  %p49_p0 = scmp.ne.s32.totalorder %s714_s14, %s710_s13 }
   0xa   : > { %p50_p1 = scmp.eq.s32.totalorder %s726_s17, 0  ;;  %p55_p2 = scmp.ne.s32.totalorder %s710_s13, %s706_s12 }
   0xb   : > { %p794_p3 = scmp.eq.s32.totalorder %s439_s18, 0  ;;  %p123_p4 = scmp.eq.s32.totalorder %s439_s18, 1 }
   0xc   : > { %p51_p5 = por %p50_p1, %p49_p0  ;;  %p129_p6 = scmp.eq.s32.totalorder %s440_s19, 1 }
   0xd   : > { %s993_s21 = scalar_select %p794_p3, 1, 0 }
   0xe   : > { %p800_p7 = por %p794_p3, %p55_p2  ;;  %p804_p8 = por %p123_p4, %p49_p0 }
   0xf   : > { %p808_p9 = por %p129_p6, %p55_p2  ;;  %p441_p10 = scmp.ge.s32.totalorder %s726_s17, 1 }
  0x10   : > { %s994_s22 = scalar_select %p800_p7, 1, 0 }
  0x11   : > { %s995_s23 = scalar_select %p804_p8, 1, 0 }
  0x12   : > { %s996_s24 = scalar_select %p808_p9, 1, 0 }
  0x13   : > { %p136_p11 = scmp.lt.s32.totalorder %s726_s17, 3  ;;  %p508_p1 = scmp.lt.s32.totalorder %s726_s17, 2 }
  0x14   : > { %s158_s28 = sshll.u32 %s987_s2, 4  ;;  %s169_s4 = sand.u32 1, %s714_s14   ;;  %s159_s28 = int_to_ptr.vmem [resolvable:$true] %s158_s28 }
  0x15   : > { %p815_p13 = pnand %p441_p10, %p136_p11  ;;  %p825_p4 = pnand %p508_p1, %p51_p5 }
  0x16   : > { %s33_s5 = sadd.s32 1, %s722_s16  ;;  %s578_s8 = scalar_lea.hbm %s986_s1, 64 }
  0x17   : > { %p491_p0 = pneg %p815_p13  ;;  %p579_p5 = scmp.ne.s32.totalorder %s986_s1, %s578_s8 }
  0x18   : > { %p585_p1 = scmp.lt.u32.totalorder %s578_s8, %s986_s1 }
  0x19   : > { %p831_p2 = pnand %p491_p0, %p794_p3 }
  0x1b   : > { %p580_p6 = pneg %p831_p2 }
  0x1d   : > { %p581_p10 = pnand %p580_p6, %p579_p5 }
  0x1f   : > { %p582_p11 = pneg %p581_p10 }
  0x21   : > { %p587_p0 = pnand %p585_p1, %p582_p11 }
  0x23   : > { %590 = shalt.err (!%p587_p0)
}
  0x24   : > { %s728_s19 = smov [#allocation7]   ;;  %s591_s6 = scalar_lea.vmem %s159_s28, 16 }
  0x25   : > { %494 = dma.hbm_to_smem (!%p831_p2), %s986_s1, 64, %s728_s19, [#allocation5]  }
  0x26   : > { %p592_p12 = scmp.ne.s32.totalorder %s159_s28, %s591_s6  ;;  %p599_p3 = scmp.lt.s32.totalorder %s159_s28, %s159_s28 }
  0x27   : > { %p600_p5 = scmp.lt.s32.totalorder %s591_s6, %s591_s6 }
  0x28   : > { %p594_p9 = pnand %p592_p12, %p580_p6 }
  0x29   : > { %p601_p10 = por %p600_p5, %p599_p3 }
  0x2a   : > { %p595_p8 = pneg %p594_p9 }
  0x2c   : > { %p602_p7 = pnand %p601_p10, %p595_p8 }
  0x2e   : > { %605 = shalt.err (!%p602_p7)
}
  0x2f   : > { %s729_s7 = smov [#allocation8]   ;;  %p35_p11 = scmp.ge.s32.totalorder %s33_s5, 2 }
  0x30   : > { %497 = dma.vmem_to_smem (!%p831_p2), %s159_s28, 16, %s729_s7, [#allocation6]  }
  0x31   : > { %s445_s8 = sshll.u32 %s169_s4, 4  ;;  %s476_s9 = sshll.u32 %s722_s16, 8 }
  0x32   : > { %s1011_s5 = smov (%p35_p11, %s33_s5), 0  ;;  %s863_s30 = scalar_lea.hbm %s985_s0, %s476_s9 }
  0x33   : > { %s37_s18 = ssub.s32 %s722_s16, %s1011_s5  ;;  %s173_s19 = scalar_lea.vmem [#allocation2], %s445_s8 }
  0x34   : > { %s181_s28 = sshll.u32 %s173_s19, 4  ;;  %p40_p3 = scmp.eq.s32.totalorder %s37_s18, 0  ;;  %s867_s28 = int_to_ptr.vmem [resolvable:$true] %s181_s28 }
  0x35   : > { %s876_s27 = scalar_lea.sflag [#allocation3], %s169_s4  ;;  %s606_s6 = scalar_lea.hbm %s863_s30, 256 }
  0x36   : > { %s872_s26 = scalar_select %p40_p3, %s714_s14, %s42_s20  }
  0x37   : > { %p607_p7 = scmp.ne.s32.totalorder %s863_s30, %s606_s6  ;;  %p608_p8 = pneg %p825_p4 }
  0x38   : > { %s611_s9 = scalar_lea.hbm %s985_s0, 512  ;;  %p612_p2 = scmp.lt.u32.totalorder %s863_s30, %s985_s0 }
  0x39   : > { %p609_p9 = pnand %p608_p8, %p607_p7  ;;  %p613_p6 = scmp.lt.u32.totalorder %s611_s9, %s606_s6 }
  0x3a   : > { %p615_p0 = scmp.lt.u32.totalorder %s606_s6, %s863_s30 }
  0x3b   : > { %p610_p12 = pneg %p609_p9  ;;  %p614_p1 = por %p613_p6, %p612_p2 }
  0x3d   : > { %p616_p5 = por %p615_p0, %p614_p1 }
  0x3f   : > { %p617_p10 = pnand %p616_p5, %p610_p12 }
  0x41   : > { %620 = shalt.err (!%p617_p10)
}
  0x42   : > { %s621_s20 = scalar_lea.vmem %s867_s28, 256  ;;  %s730_s4 = smov [#allocation2]  }
  0x43   : > { %p622_p11 = scmp.ne.s32.totalorder %s867_s28, %s621_s20  ;;  %s626_s18 = sshll.u32 %s730_s4, 4  ;;  %s627_s18 = int_to_ptr.vmem [resolvable:$false] %s626_s18 }
  0x44   : > { %s628_s19 = scalar_lea.vmem %s627_s18, 512  ;;  %p629_p9 = scmp.lt.s32.totalorder %s867_s28, %s627_s18 }
  0x45   : > { %p624_p3 = pnand %p622_p11, %p608_p8  ;;  %p630_p2 = scmp.lt.s32.totalorder %s628_s19, %s621_s20 }
  0x47   : > { %p625_p7 = pneg %p624_p3  ;;  %p631_p6 = por %p630_p2, %p629_p9 }
  0x49   : > { %p632_p1 = pnand %p631_p6, %p625_p7 }
  0x4b   : > { %635 = shalt.err (!%p632_p1)
}
  0x4c   : > { %s731_s6 = smov 64   ;;  %s732_s7 = smov 4  }
  0x4d   : > { %501 = dma.hbm_to_vmem [thread:$0]  (!%p825_p4), %s863_s30, 256, %s867_s28, %s876_s27, %s731_s6, %s731_s6, %s732_s7  }
  0x4e   : > { %193 = sbr.rel (%p815_p13) target bundleno = 156 (0x9c), region = 32  ;;  %s907_s8 = sand.u32 (!%p815_p13), 1, %s710_s13  }
  0x4f   : > { %s449_s9 = sshll.u32 (!%p815_p13), %s907_s8, 4  ;;  %s196_s10 = scalar_lea.sflag (!%p815_p13), [#allocation3], %s907_s8 }
  0x50   : > { %s199_s11 = scalar_lea.vmem (!%p815_p13), [#allocation2], %s449_s9  ;;  %p1000_p8 = scmp.ne.s32.totalorder (!%p815_p13), %s994_s22, 0 }
  0x55   : > { %689 = dma.done.wait (%p1000_p8), %s196_s10, 256  }
  0x56   : > { %691 = vsyncadd (%p1000_p8), %s196_s10, 4294967040  ;;  %p1001_p12 = scmp.ne.s32.totalorder %s993_s21, 0 }
  0x58   : > { %693 = dma.done.wait (%p1001_p12), [#allocation5], 64  }
  0x59   : > { %695 = vsyncadd (%p1001_p12), [#allocation5], 4294967232 }
  0x5a   : > { %697 = dma.done.wait (%p1001_p12), [#allocation6], 16  }
  0x5b   : > { %699 = vsyncadd (%p1001_p12), [#allocation6], 4294967280 }
  0x5c   : > { %212 = sfence }
  0x5d   : > { %s231_s25 = sld [smem:[#allocation7]]  ;;  %s452_s29 = sld [smem:[#allocation7 + $0x1]]  ;;  %v246_v0 = vld [vmem:[%s199_s11] sm:$0xf]  ;;  %v465_v1 = vld [vmem:[%s199_s11 + $0x4] sm:$0xf] }
  0x5e   : > { %s453_s30 = sld [smem:[#allocation7 + $0x2]]  ;;  %s454_s28 = sld [smem:[#allocation7 + $0x3]]  ;;  %v466_v2 = vld [vmem:[%s199_s11 + $0x8] sm:$0xf]  ;;  %v467_v4 = vld [vmem:[%s199_s11 + $0xc] sm:$0xf] }
  0x5f   : > { %s923_s22 = sld [smem:[#allocation8]]  ;;  %s456_s20 = sld [smem:[#allocation7 + $0x81]] }
  0x60   : > { %s455_s27 = sld [smem:[#allocation7 + $0x80]]  ;;  %s457_s4 = sld [smem:[#allocation7 + $0x82]] }
  0x61   : > { %s458_s18 = sld [smem:[#allocation7 + $0x83]]  ;;  %s459_s21 = sld [smem:[#allocation7 + $0x100]] }
  0x62   : > { %s460_s19 = sld [smem:[#allocation7 + $0x101]]  ;;  %s461_s6 = sld [smem:[#allocation7 + $0x102]] }
  0x63   : > { %v253_v3 = vstv %s231_s25  ;;  %v255_v6 = vstv %s452_s29  ;;  %s462_s7 = sld [smem:[#allocation7 + $0x103]]  ;;  %s925_s9 = sld [smem:[#allocation8 + $0x1]] }
  0x64   : > { %v254_v5 = vmul.f32 %v253_v3, %v246_v0  ;;  %v258_v7 = vstv %s453_s30  ;;  %v256_v8 = vmul.f32 %v465_v1, %v255_v6  ;;  %v261_v10 = vstv %s454_s28  ;;  %s464_s10 = sld [smem:[#allocation8 + $0x2]]  ;;  %s477_s11 = smul.u32 12, %s907_s8 }
  0x65   : > { %v259_v9 = vmul.f32 %v466_v2, %v258_v7  ;;  %v262_v12 = vmul.f32 %v467_v4, %v261_v10  ;;  %v275_v15 = vstv %s456_s20  ;;  %v264_v21 = vstv %s923_s22  ;;  %s478_s30 = smul.u32 192, %s718_s15  ;;  %s316_s20 = scalar_lea.sflag [#allocation4], %s907_s8 }
  0x66   : > { %v257_v11 = vadd.f32 %v256_v8, %v254_v5  ;;  %v273_v13 = vstv %s455_s27  ;;  %v278_v16 = vstv %s457_s4  ;;  %v276_v18 = vmul.f32 %v465_v1, %v275_v15  ;;  %s230_s25 = scalar_lea.vmem [#allocation9], %s477_s11  ;;  %p1002_p4 = scmp.ne.s32.totalorder %s995_s23, 0 }
  0x67   : > { %v274_v14 = vmul.f32 %v273_v13, %v246_v0  ;;  %v279_v19 = vmul.f32 %v466_v2, %v278_v16  ;;  %v281_v20 = vstv %s458_s18  ;;  %v294_v23 = vstv %s459_s21  ;;  %s330_s29 = sshll.u32 %s230_s25, 4  ;;  %s936_s27 = scalar_lea.hbm %s988_s3, %s478_s30  ;;  %s931_s29 = int_to_ptr.vmem [resolvable:$true] %s330_s29 }
  0x68   : > { %v260_v17 = vadd.f32 %v259_v9, %v257_v11  ;;  %v282_v22 = vmul.f32 %v467_v4, %v281_v20  ;;  %v296_v24 = vstv %s460_s19  ;;  %v295_v27 = vmul.f32 %v294_v23, %v246_v0  ;;  %s636_s4 = scalar_lea.vmem %s931_s29, 192  ;;  %s733_s15 = smov [#allocation9]  }
  0x69   : > { %v277_v26 = vadd.f32 %v276_v18, %v274_v14  ;;  %v297_v28 = vmul.f32 %v465_v1, %v296_v24  ;;  %v299_v29 = vstv %s461_s6  ;;  %v302_v30 = vstv %s462_s7  ;;  %p637_p13 = scmp.ne.s32.totalorder %s931_s29, %s636_s4  ;;  %s640_s18 = sshll.u32 %s733_s15, 4  ;;  %s641_s18 = int_to_ptr.vmem [resolvable:$false] %s640_s18 }
  0x6a   : > { %v263_v25 = vadd.f32 %v262_v12, %v260_v17  ;;  %v300_v34 = vmul.f32 %v466_v2, %v299_v29  ;;  %v284_v35 = vstv %s925_s9  ;;  %v303_v36 = vmul.f32 %v467_v4, %v302_v30  ;;  %s642_s21 = scalar_lea.vmem %s641_s18, 384  ;;  %p643_p10 = scmp.lt.s32.totalorder %s931_s29, %s641_s18 }
  0x6b   : > { %v280_v32 = vadd.f32 %v279_v19, %v277_v26  ;;  %v298_v33 = vadd.f32 %v297_v28, %v295_v27  ;;  %v305_v40 = vstv %s464_s10  ;;  %p638_p0 = pnand %p637_p13, %p1002_p4  ;;  %p644_p11 = scmp.lt.s32.totalorder %s642_s21, %s636_s4 }
  0x6c   : > { %v265_v31 = vadd.f32 %v264_v21, %v263_v25 }
  0x6d   : > { %v283_v38 = vadd.f32 %v282_v22, %v280_v32  ;;  %v301_v39 = vadd.f32 %v300_v34, %v298_v33  ;;  %p639_p5 = pneg %p638_p0  ;;  %p645_p3 = por %p644_p11, %p643_p10 }
  0x6e   : > { %v468_v37 = vmul.f32 -1.442695, %v265_v31 }
  0x6f   : > { %v285_v41 = vadd.f32 %v284_v35, %v283_v38  ;;  %v304_v42 = vadd.f32 %v303_v36, %v301_v39  ;;  %p646_p7 = pnand %p645_p3, %p639_p5 }
  0x70   : > { %566 = vpow2.f32 %v468_v37 }
  0x71   : > { %v469_v43 = vmul.f32 -1.442695, %v285_v41  ;;  %v306_v44 = vadd.f32 %v305_v40, %v304_v42 }
  0x73   : > { %568 = vpow2.f32 %v469_v43  ;;  %v471_v45 = vmul.f32 -1.442695, %v306_v44 }
  0x75   : > { %570 = vpow2.f32 %v471_v45 }
  0x7a   : > { %v567_v46 = vpop.eup %566 }
  0x7b   : > { %v269_v47 = vadd.f32 1.0, %v567_v46 }
  0x7d   : > { %572 = vrcp.f32 %v269_v47  ;;  %v569_v48 = vpop.eup %568 }
  0x7e   : > { %v289_v49 = vadd.f32 1.0, %v569_v48 }
  0x7f   : > { %v571_v50 = vpop.eup %570 }
  0x80   : > { %574 = vrcp.f32 %v289_v49  ;;  %v310_v51 = vadd.f32 1.0, %v571_v50 }
  0x82   : > { %576 = vrcp.f32 %v310_v51 }
  0x87   : > { %v573_v52 = vpop.eup %572 }
  0x88   : > { %272 = vst [vmem:[%s230_s25] sm:$0xf] %v573_v52 }
  0x8a   : > { %v575_v53 = vpop.eup %574 }
  0x8b   : > { %470 = vst [vmem:[%s230_s25 + $0x4] sm:$0xf] %v575_v53 }
  0x8c   : > { %v577_v54 = vpop.eup %576 }
  0x8d   : > { %472 = vst [vmem:[%s230_s25 + $0x8] sm:$0xf] %v577_v54 }
  0x8e   : > { %649 = shalt.err (!%p646_p7)
}
  0x8f   : > { %s650_s19 = scalar_lea.hbm %s936_s27, 192  ;;  %s654_s9 = scalar_lea.hbm %s988_s3, 384 }
  0x90   : > { %p651_p9 = scmp.ne.s32.totalorder %s936_s27, %s650_s19  ;;  %p655_p1 = scmp.lt.u32.totalorder %s936_s27, %s988_s3 }
  0x91   : > { %p656_p8 = scmp.lt.u32.totalorder %s654_s9, %s650_s19  ;;  %p658_p13 = scmp.lt.u32.totalorder %s650_s19, %s936_s27 }
  0x92   : > { %p652_p2 = pnand %p651_p9, %p1002_p4 }
  0x93   : > { %p657_p12 = por %p656_p8, %p655_p1 }
  0x94   : > { %p653_p6 = pneg %p652_p2 }
  0x95   : > { %p659_p0 = por %p658_p13, %p657_p12 }
  0x97   : > { %p660_p5 = pnand %p659_p0, %p653_p6 }
  0x99   : > { %663 = shalt.err (!%p660_p5)
}
  0x9a   : > { %s734_s25 = smov 64   ;;  %s735_s30 = smov 4  }
  0x9b   : > { %489 = dma.vmem_to_hbm [thread:$0]  (%p1002_p4), %s931_s29, 192, %s936_s27, %s316_s20, %s734_s25, %s734_s25, %s735_s30  }
  0x9c PF: > { %s345_s28 = sand.u32 1, %s706_s12   ;;  %p1003_p10 = scmp.ne.s32.totalorder %s996_s24, 0 }
  0x9d   : > { %p1004_p11 = scmp.ge.s32.totalorder %s726_s17, 2  ;;  %s346_s22 = scalar_lea.sflag [#allocation4], %s345_s28 }
  0x9f   : > { %p503_p3 = pnand %p1004_p11, %p1003_p10 }
  0xa1   : > { %701 = dma.done.wait (!%p503_p3), %s346_s22, 192  }
  0xa2   : > { %703 = vsyncadd (!%p503_p3), %s346_s22, 4294967104  ;;  %s21_s17 = sadd.s32 1, %s726_s17   ;;  %s1005_s12 = smov %s710_s13 }
  0xa3   : > { %p18_p7 = scmp.ge.s32.totalorder %s21_s17, 4   ;;  %s1006_s13 = smov %s714_s14 }
  0xa4   : > { %s1007_s14 = smov %s872_s26  ;;  %s1008_s15 = smov %s722_s16 }
  0xa5   : > { %s1009_s16 = smov %s1011_s5  ;;  %20 = sbr.rel (!%p18_p7) target bundleno = 8 (0x8), region = 92 }
  0xac   :  { %351 = vsyncpa [#allocation3], 1 }
  0xad   :  { %353 = vsyncpa [#allocation3 + $0x1], 1 }
  0xae   :  { %354 = vsyncpa [#allocation4], 1 }
  0xaf   :  { %356 = vsyncpa [#allocation4 + $0x1], 1 }
  0xb0   :  { %357 = vsyncpa [#allocation5], 1 }
  0xb1   :  { %359 = vsyncpa [#allocation5 + $0x1], 1 }
  0xb2   :  { %360 = vsyncpa [#allocation6], 1 }
  0xb3   :  { %362 = vsyncpa [#allocation6 + $0x1], 1 }

</bundles_post_ra>
